<compile_context>
chip_gen: v7x
topology: tpu7x:2x2x1
jax: 0.10.0
libtpu: 0.0.40
codegen_flags: <defaults>
</compile_context>

<pallas_src>
import jax
import jax.numpy as jnp
from jax.experimental import pallas as pl
from jax.experimental.pallas import tpu as pltpu

LANE = 128
SUBLANE = 8
_MIN_TILE_ROWS = 32          # multiple of 32 sublanes: legal min tile for f32/bf16/int8
_TARGET_TILE_ROWS = 8192     # 4 MiB f32 per input block -> amortizes per-grid-step cost
_MASK_FILL = -40.0           # sigmoid(-40) ~ 4e-18, bce(-40, y=0) ~ 4e-18 -> negligible


def _round_up(a, b):
    return (a + b - 1) // b * b


def _partial_sums(x2, y2, rows, tile_rows):
    """Stream (rows, 128) logits/targets; return (n_splits, 4, 8, 128) f32 per-lane
    partials of [sum(p*y), sum(p), sum(y), sum(bce)]."""
    total_tiles = (rows + tile_rows - 1) // tile_rows
    n_splits = min(2, total_tiles)                     # v7x megacore; no-op on 1-TC chips
    split_tiles = (total_tiles + n_splits - 1) // n_splits
    has_overhang = n_splits * split_tiles != total_tiles     # at most 1 dead grid step
    has_partial = (rows % tile_rows) != 0                     # at most 1 ragged tile

    def in_imap(c, i):
        tid = c * split_tiles + i
        if has_overhang:
            # Clamp the dead step of split 1 onto its previous block (same block
            # index -> no extra DMA); its contribution is skipped in the kernel.
            tid = jnp.minimum(tid, total_tiles - 1)
        return (tid, 0)

    def kernel(x_ref, y_ref, out_ref):
        c = pl.program_id(0)   # TensorCore split ("parallel")
        i = pl.program_id(1)   # streaming row-tile axis ("arbitrary")

        # Output block is resident across axis 1 -> accumulator pattern.
        @pl.when(i == 0)
        def _():
            out_ref[...] = jnp.zeros_like(out_ref)

        def fold(v):   # (tile_rows, 128) -> (8, 128): pure VPU vreg adds
            return jnp.sum(v.reshape(-1, SUBLANE, LANE), axis=0)

        def accumulate(xv, yv):
            # One shared EUP exp feeds both the sigmoid and the stable BCE log term.
            t = jnp.exp(-jnp.abs(xv))
            p = jnp.where(xv >= 0.0, 1.0, t) * pl.reciprocal(1.0 + t, approx=True)
            bce = jnp.maximum(xv, 0.0) - xv * yv + jnp.log1p(t)
            out_ref[0, 0] += fold(p * yv)   # intersection sum(p*y)
            out_ref[0, 1] += fold(p)        # sum(p)
            out_ref[0, 2] += fold(yv)       # sum(y)
            out_ref[0, 3] += fold(bce)      # BCE sum

        def fast_path():
            accumulate(x_ref[...].astype(jnp.float32),
                       y_ref[...].astype(jnp.float32))

        if not has_partial and not has_overhang:
            fast_path()                                    # every tile unmasked
        else:
            tid = c * split_tiles + i
            boundary = total_tiles - 1
            if has_partial:
                @pl.when(tid == boundary)                  # only the ragged tile masks
                def _():
                    rid = jax.lax.broadcasted_iota(jnp.int32, (tile_rows, LANE), 0)
                    valid = (boundary * tile_rows + rid) < rows     # row-level mask
                    xv = jnp.where(valid, x_ref[...].astype(jnp.float32), _MASK_FILL)
                    yv = jnp.where(valid, y_ref[...].astype(jnp.float32), 0.0)
                    accumulate(xv, yv)

                pl.when(tid < boundary)(fast_path)         # interior tiles: unmasked
            else:
                pl.when(tid < total_tiles)(fast_path)      # skip only the dead overhang step

    return pl.pallas_call(
        kernel,
        out_shape=jax.ShapeDtypeStruct((n_splits, 4, SUBLANE, LANE), jnp.float32),
        grid_spec=pltpu.PrefetchScalarGridSpec(
            num_scalar_prefetch=0,
            grid=(n_splits, split_tiles),
            in_specs=[
                pl.BlockSpec((tile_rows, LANE), in_imap),
                pl.BlockSpec((tile_rows, LANE), in_imap),
            ],
            out_specs=pl.BlockSpec((1, 4, SUBLANE, LANE), lambda c, i: (c, 0, 0, 0)),
        ),
        compiler_params=pltpu.CompilerParams(
            dimension_semantics=("parallel", "arbitrary"),
            vmem_limit_bytes=32 * 1024 * 1024,
        ),
    )(x2, y2)


def combined_loss(outputs, targets):
    """DiceLoss(mode='binary', from logits) + BCEWithLogitsLoss (mean). Scalar."""
    assert outputs.shape == targets.shape
    n = int(outputs.size)
    assert 0 < n < 2**31, "flat int32 indexing assumes < 2^31 elements"

    x = outputs.reshape(-1)                    # native dtype (f32 or bf16), no copy
    y = targets.reshape(-1)                    # native dtype; kernel widens in-register
    if y.dtype == jnp.bool_:
        y = y.astype(jnp.int8)                 # narrow cast only; never upcast to f32

    rows = n // LANE
    rem = n - rows * LANE

    inter = jnp.float32(0.0)
    sum_p = jnp.float32(0.0)
    sum_y = jnp.float32(0.0)
    bce_sum = jnp.float32(0.0)

    if rows > 0:
        main = rows * LANE
        x2 = (x if rem == 0 else x[:main]).reshape(rows, LANE)   # free reshape if aligned
        y2 = (y if rem == 0 else y[:main]).reshape(rows, LANE)
        tile_rows = max(_MIN_TILE_ROWS,
                        min(_TARGET_TILE_ROWS, _round_up(rows, _MIN_TILE_ROWS)))
        partials = _partial_sums(x2, y2, rows, tile_rows)
        sums = jnp.sum(partials, axis=(0, 2, 3))                 # tiny cross-lane reduce
        inter, sum_p, sum_y, bce_sum = sums[0], sums[1], sums[2], sums[3]

    if rem:
        # <=127-element ragged tail: cheaper as plain XLA than padding / lane masks.
        xt = x[rows * LANE:].astype(jnp.float32)
        yt = y[rows * LANE:].astype(jnp.float32)
        t = jnp.exp(-jnp.abs(xt))
        p = jnp.where(xt >= 0.0, 1.0, t) / (1.0 + t)
        inter = inter + jnp.sum(p * yt)
        sum_p = sum_p + jnp.sum(p)
        sum_y = sum_y + jnp.sum(yt)
        bce_sum = bce_sum + jnp.sum(jnp.maximum(xt, 0.0) - xt * yt + jnp.log1p(t))

    eps = 1e-7
    dice_score = (2.0 * inter) / jnp.maximum(sum_p + sum_y, eps)
    # smp DiceLoss masks classes that are absent from the ground truth.
    dice_loss = (1.0 - dice_score) * (sum_y > 0).astype(jnp.float32)
    bce_loss = bce_sum / jnp.float32(n)
    return dice_loss + bce_loss


def _reference_combined_loss(outputs, targets):
    """Pure-JAX reference mirroring the PyTorch module, for a sanity check."""
    x = outputs.reshape(-1).astype(jnp.float32)
    y = targets.reshape(-1).astype(jnp.float32)
    p = jax.nn.sigmoid(x)
    inter = jnp.sum(p * y)
    card = jnp.sum(p) + jnp.sum(y)
    dice_score = 2.0 * inter / jnp.maximum(card, 1e-7)
    dice_loss = (1.0 - dice_score) * (jnp.sum(y) > 0).astype(jnp.float32)
    bce = jnp.mean(jnp.maximum(x, 0.0) - x * y + jnp.log1p(jnp.exp(-jnp.abs(x))))
    return dice_loss + bce


if __name__ == "__main__":
    key = jax.random.PRNGKey(0)
    k1, k2 = jax.random.split(key)

    # Binary-segmentation style inputs: (batch=2, channels=1, H=16, W=16).
    outputs = jax.random.normal(k1, (2, 1, 16, 16), dtype=jnp.float32)            # logits
    targets = jax.random.bernoulli(k2, 0.4, (2, 1, 16, 16)).astype(jnp.float32)   # {0,1}

    loss = jax.block_until_ready(combined_loss(outputs, targets))
    ref = jax.block_until_ready(_reference_combined_loss(outputs, targets))

    # approx=True EUP reciprocal in the in-kernel sigmoid is ~1e-4 relative per
    # element; the scalar loss stays well inside 2e-3 of the exact reference.
    assert jnp.allclose(loss, ref, rtol=2e-3, atol=2e-3), (loss, ref)

    print("KERNEL_OK")
</pallas_src>

<mosaic_0001>
module attributes {stable_mosaic.version = 11 : i64} {
  func.func @kernel(%arg0: i32, %arg1: i32, %arg2: memref<32x128xf32, #tpu.memory_space<vmem>>, %arg3: memref<32x128xf32, #tpu.memory_space<vmem>>, %arg4: memref<1x4x8x128xf32, #tpu.memory_space<vmem>>) attributes {dimension_semantics = [#tpu.dimension_semantics<parallel>, #tpu.dimension_semantics<arbitrary>], iteration_bounds = array<i64: 1, 1>, scalar_prefetch = 0 : i64, scratch_operands = 0 : i64, tpu.core_type = #tpu.core_type<tc>, window_params = [{transform_indices = @transform_0, window_bounds = array<i64: 32, 128>}, {transform_indices = @transform_1, window_bounds = array<i64: 32, 128>}, {transform_indices = @transform_2, window_bounds = array<i64: 1, 4, 8, 128>}]} {
    %c0_i32 = arith.constant 0 : i32
    %0 = arith.cmpi eq, %arg1, %c0_i32 : i32
    %1 = arith.extui %0 : i1 to i32
    %c0_i32_0 = arith.constant 0 : i32
    %2 = arith.cmpi ne, %1, %c0_i32_0 : i32
    scf.if %2 {
      %cst = arith.constant 0.000000e+00 : f32
      %11 = vector.broadcast %cst : f32 to vector<1x4x8x128xf32>
      %c0 = arith.constant 0 : index
      %c0_5 = arith.constant 0 : index
      %c0_6 = arith.constant 0 : index
      %c0_7 = arith.constant 0 : index
      %12 = vector.load %arg4[%c0, %c0_5, %c0_6, %c0_7] : memref<1x4x8x128xf32, #tpu.memory_space<vmem>>, vector<1x4x8x128xf32>
      tpu.vector_store %arg4[%c0, %c0_5, %c0_6, %c0_7], %11 {strides = array<i32>} : memref<1x4x8x128xf32, #tpu.memory_space<vmem>>, vector<1x4x8x128xf32>,
    } else {
    }
    %c1_i32 = arith.constant 1 : i32
    %3 = arith.muli %arg0, %c1_i32 : i32
    %4 = arith.addi %3, %arg1 : i32
    %c0_i32_1 = arith.constant 0 : i32
    %5 = arith.cmpi eq, %4, %c0_i32_1 : i32
    %6 = arith.extui %5 : i1 to i32
    %c0_i32_2 = arith.constant 0 : i32
    %7 = arith.cmpi ne, %6, %c0_i32_2 : i32
    scf.if %7 {
      %11 = tpu.iota {dimensions = array<i32: 0>} : vector<32x128xi32>
      %c0_i32_5 = arith.constant 0 : i32
      %12 = vector.broadcast %c0_i32_5 : i32 to vector<32x128xi32>
      %13 = arith.addi %12, %11 : vector<32x128xi32>
      %c4_i32 = arith.constant 4 : i32
      %14 = vector.broadcast %c4_i32 : i32 to vector<32x128xi32>
      %15 = arith.cmpi slt, %13, %14 : vector<32x128xi32>
      %c0 = arith.constant 0 : index
      %c0_6 = arith.constant 0 : index
      %16 = vector.load %arg2[%c0, %c0_6] : memref<32x128xf32, #tpu.memory_space<vmem>>, vector<32x128xf32>
      %cst = arith.constant -4.000000e+01 : f32
      %17 = vector.broadcast %cst : f32 to vector<32x128xf32>
      %18 = arith.select %15, %16, %17 : vector<32x128xi1>, vector<32x128xf32>
      %c0_7 = arith.constant 0 : index
      %c0_8 = arith.constant 0 : index
      %19 = vector.load %arg3[%c0_7, %c0_8] : memref<32x128xf32, #tpu.memory_space<vmem>>, vector<32x128xf32>
      %cst_9 = arith.constant 0.000000e+00 : f32
      %20 = vector.broadcast %cst_9 : f32 to vector<32x128xf32>
      %21 = arith.select %15, %19, %20 : vector<32x128xi1>, vector<32x128xf32>
      %22 = math.absf %18 : vector<32x128xf32>
      %cst_10 = arith.constant 0.000000e+00 : f32
      %23 = vector.broadcast %cst_10 : f32 to vector<32x128xf32>
      %24 = arith.subf %23, %22 : vector<32x128xf32>
      %25 = math.exp %24 : vector<32x128xf32>
      %cst_11 = arith.constant 0.000000e+00 : f32
      %26 = vector.broadcast %cst_11 : f32 to vector<32x128xf32>
      %27 = arith.cmpf oge, %18, %26 : vector<32x128xf32>
      %cst_12 = arith.constant 1.000000e+00 : f32
      %28 = vector.broadcast %cst_12 : f32 to vector<32x128xf32>
      %29 = arith.select %27, %28, %25 : vector<32x128xi1>, vector<32x128xf32>
      %cst_13 = arith.constant 1.000000e+00 : f32
      %30 = vector.broadcast %cst_13 : f32 to vector<32x128xf32>
      %31 = arith.addf %30, %25 : vector<32x128xf32>
      %32 = tpu.reciprocal %31 {approx = true} : vector<32x128xf32> -> vector<32x128xf32>
      %33 = arith.mulf %29, %32 : vector<32x128xf32>
      %cst_14 = arith.constant 0.000000e+00 : f32
      %34 = vector.broadcast %cst_14 : f32 to vector<32x128xf32>
      %35 = arith.maximumf %18, %34 : vector<32x128xf32>
      %36 = arith.mulf %18, %21 : vector<32x128xf32>
      %37 = arith.subf %35, %36 : vector<32x128xf32>
      %38 = math.log1p %25 : vector<32x128xf32>
      %39 = arith.addf %37, %38 : vector<32x128xf32>
      %c0_15 = arith.constant 0 : index
      %c0_16 = arith.constant 0 : index
      %c0_17 = arith.constant 0 : index
      %c0_18 = arith.constant 0 : index
      %40 = vector.load %arg4[%c0_15, %c0_16, %c0_17, %c0_18] : memref<1x4x8x128xf32, #tpu.memory_space<vmem>>, vector<1x1x8x128xf32>
      %41 = vector.shape_cast %40 : vector<1x1x8x128xf32> to vector<8x128xf32>
      %42 = arith.mulf %33, %21 : vector<32x128xf32>
      %43 = vector.shape_cast %42 : vector<32x128xf32> to vector<4x8x128xf32>
      %cst_19 = arith.constant dense<0.000000e+00> : vector<8x128xf32>
      %44 = vector.multi_reduction <add>, %43, %cst_19 [0] : vector<4x8x128xf32> to vector<8x128xf32>
      %45 = arith.addf %41, %44 : vector<8x128xf32>
      %c0_20 = arith.constant 0 : index
      %c0_21 = arith.constant 0 : index
      %c0_22 = arith.constant 0 : index
      %c0_23 = arith.constant 0 : index
      %46 = vector.load %arg4[%c0_20, %c0_21, %c0_22, %c0_23] : memref<1x4x8x128xf32, #tpu.memory_space<vmem>>, vector<1x1x8x128xf32>
      %47 = vector.shape_cast %46 : vector<1x1x8x128xf32> to vector<8x128xf32>
      %48 = vector.shape_cast %45 : vector<8x128xf32> to vector<1x1x8x128xf32>
      tpu.vector_store %arg4[%c0_20, %c0_21, %c0_22, %c0_23], %48 {strides = array<i32>} : memref<1x4x8x128xf32, #tpu.memory_space<vmem>>, vector<1x1x8x128xf32>,
      %c0_24 = arith.constant 0 : index
      %c1 = arith.constant 1 : index
      %c0_25 = arith.constant 0 : index
      %c0_26 = arith.constant 0 : index
      %49 = vector.load %arg4[%c0_24, %c1, %c0_25, %c0_26] : memref<1x4x8x128xf32, #tpu.memory_space<vmem>>, vector<1x1x8x128xf32>
      %50 = vector.shape_cast %49 : vector<1x1x8x128xf32> to vector<8x128xf32>
      %51 = vector.shape_cast %33 : vector<32x128xf32> to vector<4x8x128xf32>
      %cst_27 = arith.constant dense<0.000000e+00> : vector<8x128xf32>
      %52 = vector.multi_reduction <add>, %51, %cst_27 [0] : vector<4x8x128xf32> to vector<8x128xf32>
      %53 = arith.addf %50, %52 : vector<8x128xf32>
      %c0_28 = arith.constant 0 : index
      %c1_29 = arith.constant 1 : index
      %c0_30 = arith.constant 0 : index
      %c0_31 = arith.constant 0 : index
      %54 = vector.load %arg4[%c0_28, %c1_29, %c0_30, %c0_31] : memref<1x4x8x128xf32, #tpu.memory_space<vmem>>, vector<1x1x8x128xf32>
      %55 = vector.shape_cast %54 : vector<1x1x8x128xf32> to vector<8x128xf32>
      %56 = vector.shape_cast %53 : vector<8x128xf32> to vector<1x1x8x128xf32>
      tpu.vector_store %arg4[%c0_28, %c1_29, %c0_30, %c0_31], %56 {strides = array<i32>} : memref<1x4x8x128xf32, #tpu.memory_space<vmem>>, vector<1x1x8x128xf32>,
      %c0_32 = arith.constant 0 : index
      %c2 = arith.constant 2 : index
      %c0_33 = arith.constant 0 : index
      %c0_34 = arith.constant 0 : index
      %57 = vector.load %arg4[%c0_32, %c2, %c0_33, %c0_34] : memref<1x4x8x128xf32, #tpu.memory_space<vmem>>, vector<1x1x8x128xf32>
      %58 = vector.shape_cast %57 : vector<1x1x8x128xf32> to vector<8x128xf32>
      %59 = vector.shape_cast %21 : vector<32x128xf32> to vector<4x8x128xf32>
      %cst_35 = arith.constant dense<0.000000e+00> : vector<8x128xf32>
      %60 = vector.multi_reduction <add>, %59, %cst_35 [0] : vector<4x8x128xf32> to vector<8x128xf32>
      %61 = arith.addf %58, %60 : vector<8x128xf32>
      %c0_36 = arith.constant 0 : index
      %c2_37 = arith.constant 2 : index
      %c0_38 = arith.constant 0 : index
      %c0_39 = arith.constant 0 : index
      %62 = vector.load %arg4[%c0_36, %c2_37, %c0_38, %c0_39] : memref<1x4x8x128xf32, #tpu.memory_space<vmem>>, vector<1x1x8x128xf32>
      %63 = vector.shape_cast %62 : vector<1x1x8x128xf32> to vector<8x128xf32>
      %64 = vector.shape_cast %61 : vector<8x128xf32> to vector<1x1x8x128xf32>
      tpu.vector_store %arg4[%c0_36, %c2_37, %c0_38, %c0_39], %64 {strides = array<i32>} : memref<1x4x8x128xf32, #tpu.memory_space<vmem>>, vector<1x1x8x128xf32>,
      %c0_40 = arith.constant 0 : index
      %c3 = arith.constant 3 : index
      %c0_41 = arith.constant 0 : index
      %c0_42 = arith.constant 0 : index
      %65 = vector.load %arg4[%c0_40, %c3, %c0_41, %c0_42] : memref<1x4x8x128xf32, #tpu.memory_space<vmem>>, vector<1x1x8x128xf32>
      %66 = vector.shape_cast %65 : vector<1x1x8x128xf32> to vector<8x128xf32>
      %67 = vector.shape_cast %39 : vector<32x128xf32> to vector<4x8x128xf32>
      %cst_43 = arith.constant dense<0.000000e+00> : vector<8x128xf32>
      %68 = vector.multi_reduction <add>, %67, %cst_43 [0] : vector<4x8x128xf32> to vector<8x128xf32>
      %69 = arith.addf %66, %68 : vector<8x128xf32>
      %c0_44 = arith.constant 0 : index
      %c3_45 = arith.constant 3 : index
      %c0_46 = arith.constant 0 : index
      %c0_47 = arith.constant 0 : index
      %70 = vector.load %arg4[%c0_44, %c3_45, %c0_46, %c0_47] : memref<1x4x8x128xf32, #tpu.memory_space<vmem>>, vector<1x1x8x128xf32>
      %71 = vector.shape_cast %70 : vector<1x1x8x128xf32> to vector<8x128xf32>
      %72 = vector.shape_cast %69 : vector<8x128xf32> to vector<1x1x8x128xf32>
      tpu.vector_store %arg4[%c0_44, %c3_45, %c0_46, %c0_47], %72 {strides = array<i32>} : memref<1x4x8x128xf32, #tpu.memory_space<vmem>>, vector<1x1x8x128xf32>,
    } else {
    }
    %c0_i32_3 = arith.constant 0 : i32
    %8 = arith.cmpi slt, %4, %c0_i32_3 : i32
    %9 = arith.extui %8 : i1 to i32
    %c0_i32_4 = arith.constant 0 : i32
    %10 = arith.cmpi ne, %9, %c0_i32_4 : i32
    scf.if %10 {
      %c0 = arith.constant 0 : index
      %c0_5 = arith.constant 0 : index
      %11 = vector.load %arg2[%c0, %c0_5] : memref<32x128xf32, #tpu.memory_space<vmem>>, vector<32x128xf32>
      %c0_6 = arith.constant 0 : index
      %c0_7 = arith.constant 0 : index
      %12 = vector.load %arg3[%c0_6, %c0_7] : memref<32x128xf32, #tpu.memory_space<vmem>>, vector<32x128xf32>
      %13 = math.absf %11 : vector<32x128xf32>
      %cst = arith.constant 0.000000e+00 : f32
      %14 = vector.broadcast %cst : f32 to vector<32x128xf32>
      %15 = arith.subf %14, %13 : vector<32x128xf32>
      %16 = math.exp %15 : vector<32x128xf32>
      %cst_8 = arith.constant 0.000000e+00 : f32
      %17 = vector.broadcast %cst_8 : f32 to vector<32x128xf32>
      %18 = arith.cmpf oge, %11, %17 : vector<32x128xf32>
      %cst_9 = arith.constant 1.000000e+00 : f32
      %19 = vector.broadcast %cst_9 : f32 to vector<32x128xf32>
      %20 = arith.select %18, %19, %16 : vector<32x128xi1>, vector<32x128xf32>
      %cst_10 = arith.constant 1.000000e+00 : f32
      %21 = vector.broadcast %cst_10 : f32 to vector<32x128xf32>
      %22 = arith.addf %21, %16 : vector<32x128xf32>
      %23 = tpu.reciprocal %22 {approx = true} : vector<32x128xf32> -> vector<32x128xf32>
      %24 = arith.mulf %20, %23 : vector<32x128xf32>
      %cst_11 = arith.constant 0.000000e+00 : f32
      %25 = vector.broadcast %cst_11 : f32 to vector<32x128xf32>
      %26 = arith.maximumf %11, %25 : vector<32x128xf32>
      %27 = arith.mulf %11, %12 : vector<32x128xf32>
      %28 = arith.subf %26, %27 : vector<32x128xf32>
      %29 = math.log1p %16 : vector<32x128xf32>
      %30 = arith.addf %28, %29 : vector<32x128xf32>
      %c0_12 = arith.constant 0 : index
      %c0_13 = arith.constant 0 : index
      %c0_14 = arith.constant 0 : index
      %c0_15 = arith.constant 0 : index
      %31 = vector.load %arg4[%c0_12, %c0_13, %c0_14, %c0_15] : memref<1x4x8x128xf32, #tpu.memory_space<vmem>>, vector<1x1x8x128xf32>
      %32 = vector.shape_cast %31 : vector<1x1x8x128xf32> to vector<8x128xf32>
      %33 = arith.mulf %24, %12 : vector<32x128xf32>
      %34 = vector.shape_cast %33 : vector<32x128xf32> to vector<4x8x128xf32>
      %cst_16 = arith.constant dense<0.000000e+00> : vector<8x128xf32>
      %35 = vector.multi_reduction <add>, %34, %cst_16 [0] : vector<4x8x128xf32> to vector<8x128xf32>
      %36 = arith.addf %32, %35 : vector<8x128xf32>
      %c0_17 = arith.constant 0 : index
      %c0_18 = arith.constant 0 : index
      %c0_19 = arith.constant 0 : index
      %c0_20 = arith.constant 0 : index
      %37 = vector.load %arg4[%c0_17, %c0_18, %c0_19, %c0_20] : memref<1x4x8x128xf32, #tpu.memory_space<vmem>>, vector<1x1x8x128xf32>
      %38 = vector.shape_cast %37 : vector<1x1x8x128xf32> to vector<8x128xf32>
      %39 = vector.shape_cast %36 : vector<8x128xf32> to vector<1x1x8x128xf32>
      tpu.vector_store %arg4[%c0_17, %c0_18, %c0_19, %c0_20], %39 {strides = array<i32>} : memref<1x4x8x128xf32, #tpu.memory_space<vmem>>, vector<1x1x8x128xf32>,
      %c0_21 = arith.constant 0 : index
      %c1 = arith.constant 1 : index
      %c0_22 = arith.constant 0 : index
      %c0_23 = arith.constant 0 : index
      %40 = vector.load %arg4[%c0_21, %c1, %c0_22, %c0_23] : memref<1x4x8x128xf32, #tpu.memory_space<vmem>>, vector<1x1x8x128xf32>
      %41 = vector.shape_cast %40 : vector<1x1x8x128xf32> to vector<8x128xf32>
      %42 = vector.shape_cast %24 : vector<32x128xf32> to vector<4x8x128xf32>
      %cst_24 = arith.constant dense<0.000000e+00> : vector<8x128xf32>
      %43 = vector.multi_reduction <add>, %42, %cst_24 [0] : vector<4x8x128xf32> to vector<8x128xf32>
      %44 = arith.addf %41, %43 : vector<8x128xf32>
      %c0_25 = arith.constant 0 : index
      %c1_26 = arith.constant 1 : index
      %c0_27 = arith.constant 0 : index
      %c0_28 = arith.constant 0 : index
      %45 = vector.load %arg4[%c0_25, %c1_26, %c0_27, %c0_28] : memref<1x4x8x128xf32, #tpu.memory_space<vmem>>, vector<1x1x8x128xf32>
      %46 = vector.shape_cast %45 : vector<1x1x8x128xf32> to vector<8x128xf32>
      %47 = vector.shape_cast %44 : vector<8x128xf32> to vector<1x1x8x128xf32>
      tpu.vector_store %arg4[%c0_25, %c1_26, %c0_27, %c0_28], %47 {strides = array<i32>} : memref<1x4x8x128xf32, #tpu.memory_space<vmem>>, vector<1x1x8x128xf32>,
      %c0_29 = arith.constant 0 : index
      %c2 = arith.constant 2 : index
      %c0_30 = arith.constant 0 : index
      %c0_31 = arith.constant 0 : index
      %48 = vector.load %arg4[%c0_29, %c2, %c0_30, %c0_31] : memref<1x4x8x128xf32, #tpu.memory_space<vmem>>, vector<1x1x8x128xf32>
      %49 = vector.shape_cast %48 : vector<1x1x8x128xf32> to vector<8x128xf32>
      %50 = vector.shape_cast %12 : vector<32x128xf32> to vector<4x8x128xf32>
      %cst_32 = arith.constant dense<0.000000e+00> : vector<8x128xf32>
      %51 = vector.multi_reduction <add>, %50, %cst_32 [0] : vector<4x8x128xf32> to vector<8x128xf32>
      %52 = arith.addf %49, %51 : vector<8x128xf32>
      %c0_33 = arith.constant 0 : index
      %c2_34 = arith.constant 2 : index
      %c0_35 = arith.constant 0 : index
      %c0_36 = arith.constant 0 : index
      %53 = vector.load %arg4[%c0_33, %c2_34, %c0_35, %c0_36] : memref<1x4x8x128xf32, #tpu.memory_space<vmem>>, vector<1x1x8x128xf32>
      %54 = vector.shape_cast %53 : vector<1x1x8x128xf32> to vector<8x128xf32>
      %55 = vector.shape_cast %52 : vector<8x128xf32> to vector<1x1x8x128xf32>
      tpu.vector_store %arg4[%c0_33, %c2_34, %c0_35, %c0_36], %55 {strides = array<i32>} : memref<1x4x8x128xf32, #tpu.memory_space<vmem>>, vector<1x1x8x128xf32>,
      %c0_37 = arith.constant 0 : index
      %c3 = arith.constant 3 : index
      %c0_38 = arith.constant 0 : index
      %c0_39 = arith.constant 0 : index
      %56 = vector.load %arg4[%c0_37, %c3, %c0_38, %c0_39] : memref<1x4x8x128xf32, #tpu.memory_space<vmem>>, vector<1x1x8x128xf32>
      %57 = vector.shape_cast %56 : vector<1x1x8x128xf32> to vector<8x128xf32>
      %58 = vector.shape_cast %30 : vector<32x128xf32> to vector<4x8x128xf32>
      %cst_40 = arith.constant dense<0.000000e+00> : vector<8x128xf32>
      %59 = vector.multi_reduction <add>, %58, %cst_40 [0] : vector<4x8x128xf32> to vector<8x128xf32>
      %60 = arith.addf %57, %59 : vector<8x128xf32>
      %c0_41 = arith.constant 0 : index
      %c3_42 = arith.constant 3 : index
      %c0_43 = arith.constant 0 : index
      %c0_44 = arith.constant 0 : index
      %61 = vector.load %arg4[%c0_41, %c3_42, %c0_43, %c0_44] : memref<1x4x8x128xf32, #tpu.memory_space<vmem>>, vector<1x1x8x128xf32>
      %62 = vector.shape_cast %61 : vector<1x1x8x128xf32> to vector<8x128xf32>
      %63 = vector.shape_cast %60 : vector<8x128xf32> to vector<1x1x8x128xf32>
      tpu.vector_store %arg4[%c0_41, %c3_42, %c0_43, %c0_44], %63 {strides = array<i32>} : memref<1x4x8x128xf32, #tpu.memory_space<vmem>>, vector<1x1x8x128xf32>,
    } else {
    }
    return
  }
  func.func @transform_0(%arg0: i32, %arg1: i32) -> (i32, i32) {
    %c1_i32 = arith.constant 1 : i32
    %0 = arith.muli %arg0, %c1_i32 : i32
    %1 = arith.addi %0, %arg1 : i32
    %c0_i32 = arith.constant 0 : i32
    %c0_i32_0 = arith.constant 0 : i32
    return %1, %c0_i32 : i32, i32
  }
  func.func @transform_1(%arg0: i32, %arg1: i32) -> (i32, i32) {
    %c1_i32 = arith.constant 1 : i32
    %0 = arith.muli %arg0, %c1_i32 : i32
    %1 = arith.addi %0, %arg1 : i32
    %c0_i32 = arith.constant 0 : i32
    %c0_i32_0 = arith.constant 0 : i32
    return %1, %c0_i32 : i32, i32
  }
  func.func @transform_2(%arg0: i32, %arg1: i32) -> (i32, i32, i32, i32) {
    %c0_i32 = arith.constant 0 : i32
    %c0_i32_0 = arith.constant 0 : i32
    %c0_i32_1 = arith.constant 0 : i32
    %c0_i32_2 = arith.constant 0 : i32
    return %arg0, %c0_i32, %c0_i32_0, %c0_i32_1 : i32, i32, i32, i32
  }
}

</mosaic_0001>

<bundles_post_ra>
// kernel: tpu_custom_call.1
= control target key start
LH: loop header
LB: loop body
LE: loop exit
PB: predicated region body
PF: predicated region fallthrough
CT: control target
= control target key end

     0   :  { %7 = vsyncpa [#allocation3], 0  ;;  %s514_s0 = inlined_call_operand.hbm [shape: f32[4,128], index: 0, kind: input, shape index: {}]   ;;  %s515_s1 = inlined_call_operand.hbm [shape: f32[4,128], index: 1, kind: input, shape index: {}]   ;;  %s516_s2 = inlined_call_operand.hbm [shape: f32[1,4,8,128], index: 2, kind: output, shape index: {}]  }
   0x1   :  { %8 = vsyncpa [#allocation6], 0 }
   0x2   :  { %9 = vsyncpa [#allocation4], 0 }
   0x3   :  { %18 = vsyncadd [#allocation3], 448  ;;  %s456_s9 = smov [#allocation2]   ;;  %s384_s13 = scalar_lea.hbm %s514_s0, 64 }
   0x4   :  { %s23_s10 = sshll.u32 %s456_s9, 4  ;;  %p385_p0 = scmp.ne.s32.totalorder %s514_s0, %s384_s13  ;;  %s24_s10 = int_to_ptr.vmem [resolvable:$true] %s23_s10 }
   0x5   :  { %p388_p1 = scmp.lt.u32.totalorder %s384_s13, %s514_s0 }
   0x7   :  { %p390_p2 = pnand %p388_p1, %p385_p0 }
   0x9   :  { %393 = shalt.err (!%p390_p2)
}
   0xa   :  { %s394_s18 = scalar_lea.vmem %s24_s10, 64  ;;  %s398_s19 = scalar_lea.vmem %s24_s10, 512 }
   0xb   :  { %p395_p3 = scmp.ne.s32.totalorder %s24_s10, %s394_s18  ;;  %p399_p4 = scmp.lt.s32.totalorder %s24_s10, %s24_s10 }
   0xc   :  { %p400_p5 = scmp.lt.s32.totalorder %s398_s19, %s394_s18 }
   0xe   :  { %p401_p6 = por %p400_p5, %p399_p4 }
  0x10   :  { %p402_p7 = pnand %p401_p6, %p395_p3 }
  0x12   :  { %405 = shalt.err (!%p402_p7)
}
  0x13   :  { %s457_s20 = smov 64   ;;  %s458_s21 = smov 4  }
  0x14   :  { %29 = dma.hbm_to_vmem [thread:$0]  %s514_s0, 64, %s24_s10, [#allocation3], %s457_s20, %s457_s20, %s458_s21  }
  0x15   :  { %38 = vsyncadd [#allocation6], 448  ;;  %s459_s24 = smov [#allocation5]   ;;  %s406_s28 = scalar_lea.hbm %s515_s1, 64 }
  0x16   :  { %s43_s25 = sshll.u32 %s459_s24, 4  ;;  %p407_p8 = scmp.ne.s32.totalorder %s515_s1, %s406_s28  ;;  %s44_s25 = int_to_ptr.vmem [resolvable:$true] %s43_s25 }
  0x17   :  { %p410_p9 = scmp.lt.u32.totalorder %s406_s28, %s515_s1 }
  0x19   :  { %p412_p10 = pnand %p410_p9, %p407_p8 }
  0x1b   :  { %415 = shalt.err (!%p412_p10)
}
  0x1c   :  { %s416_s5 = scalar_lea.vmem %s44_s25, 64  ;;  %s420_s0 = scalar_lea.vmem %s44_s25, 512 }
  0x1d   :  { %p417_p11 = scmp.ne.s32.totalorder %s44_s25, %s416_s5  ;;  %p421_p12 = scmp.lt.s32.totalorder %s44_s25, %s44_s25 }
  0x1e   :  { %p422_p13 = scmp.lt.s32.totalorder %s420_s0, %s416_s5 }
  0x20   :  { %p423_p0 = por %p422_p13, %p421_p12 }
  0x22   :  { %p424_p1 = pnand %p423_p0, %p417_p11 }
  0x24   :  { %427 = shalt.err (!%p424_p1)
}
  0x25   :  { %49 = dma.hbm_to_vmem [thread:$0]  %s515_s1, 64, %s44_s25, [#allocation6], %s457_s20, %s457_s20, %s458_s21  }
  0x26   :  { %450 = dma.done.wait [#allocation3], 512  }
  0x27   :  { %451 = vsyncadd [#allocation3], 4294966784 }
  0x28   :  { %452 = dma.done.wait [#allocation6], 512  }
  0x29   :  { %453 = vsyncadd [#allocation6], 4294966784  ;;  %v77_v0 = vlaneseq  ;;  %v86_v2 = vld [vmem:[#allocation2] sm:$0xff]  ;;  %s460_s1 = smov [#allocation7]  }
  0x2a   :  { %v94_v3 = vld [vmem:[#allocation5] sm:$0xff]  ;;  %s357_s8 = sshll.u32 %s460_s1, 4  ;;  %s358_s8 = int_to_ptr.vmem [resolvable:$true] %s357_s8 }
  0x2b   :  { %v78_v1 = vshrl.u32 %v77_v0, 7  ;;  %s428_s9 = scalar_lea.vmem %s358_s8, 512  ;;  %p433_p3 = scmp.lt.s32.totalorder %s358_s8, %s358_s8 }
  0x2c   :  { %p429_p2 = scmp.ne.s32.totalorder %s358_s8, %s428_s9  ;;  %p434_p4 = scmp.lt.s32.totalorder %s428_s9, %s428_s9 }
  0x2d   :  { %vm82_vm0 = vcmp.lt.s32.totalorder %v78_v1, 4 }
  0x2e   :  { %v90_v4 = vsel %vm82_vm0, %v86_v2, -40.0  ;;  %v98_v5 = vsel %vm82_vm0, %v94_v3, 0.0  ;;  %p435_p5 = por %p434_p4, %p433_p3 }
  0x2f   :  { %v102_v6 = vand.u32 2147483647, %v90_v4  ;;  %213 = vst [vmem:[#allocation7 + $0x10] sm:$0xff] %v98_v5  ;;  %vm118_vm1 = vcmp.ge.f32.partialorder %v90_v4, 0.0  ;;  %v142_v13 = vmul.f32 %v98_v5, %v90_v4  ;;  %v138_v14 = vmax.f32 %v90_v4, 0.0 }
  0x30   :  { %p436_p6 = pnand %p435_p5, %p429_p2 }
  0x31   :  { %v106_v7 = vsub.f32 0.0, %v102_v6  ;;  %v146_v21 = vsub.f32 %v138_v14, %v142_v13 }
  0x33   :  { %v110_v8 = vmul.f32 1.442695, %v106_v7 }
  0x35   :  { %378 = vpow2.f32 %v110_v8 }
  0x3f   :  { %v379_v9 = vpop.eup %378 }
  0x40   :  { %v126_v10 = vadd.f32 1.0, %v379_v9  ;;  %v153_v11 = vmul.f32 -0.5, %v379_v9  ;;  %v156_v15 = vand.u32 2147483647, %v379_v9  ;;  %v122_v16 = vsel %vm118_vm1, 1.0, %v379_v9 }
  0x42   :  { %380 = vrcp.f32 %v126_v10  ;;  %v154_v12 = vadd.f32 1.0, %v153_v11  ;;  %vm157_vm2 = vcmp.lt.f32.partialorder %v156_v15, 0.0004427343 }
  0x43   :  { %382 = vlog2.f32 %v126_v10 }
  0x44   :  { %v155_v18 = vmul.f32 %v379_v9, %v154_v12 }
  0x4c   :  { %v381_v17 = vpop.eup %380 }
  0x4d   :  { %v383_v19 = vpop.eup %382  ;;  %v134_v20 = vmul.f32 %v381_v17, %v122_v16 }
  0x4e   :  { %v152_v22 = vmul.f32 0.6931472, %v383_v19 }
  0x4f   :  { %v191_v23 = vmul.f32 %v134_v20, %v98_v5  ;;  %v202_v24 = vadd.f32 4.2483537e-18, %v134_v20 }
  0x50   :  { %v158_v25 = vsel %vm157_vm2, %v155_v18, %v152_v22 }
  0x51   :  { %v203_v26 = vadd.f32 4.2483537e-18, %v202_v24  ;;  %v186_v27 = vadd.f32 %v158_v25, %v146_v21  ;;  %199 = vst [vmem:[#allocation7] sm:$0xff] %v191_v23 }
  0x53   :  { %v204_v28 = vadd.f32 4.2483537e-18, %v203_v26  ;;  %v216_v29 = vadd.f32 4.2483537e-18, %v186_v27 }
  0x55   :  { %v217_v30 = vadd.f32 4.2483537e-18, %v216_v29  ;;  %206 = vst [vmem:[#allocation7 + $0x8] sm:$0xff] %v204_v28 }
  0x57   :  { %v218_v31 = vadd.f32 4.2483537e-18, %v217_v30 }
  0x59   :  { %220 = vst [vmem:[#allocation7 + $0x18] sm:$0xff] %v218_v31 }
  0x5a   :  { %439 = shalt.err (!%p436_p6)
}
  0x5b   :  { %s440_s12 = scalar_lea.hbm %s516_s2, 512 }
  0x5c   :  { %p441_p7 = scmp.ne.s32.totalorder %s516_s2, %s440_s12  ;;  %p444_p8 = scmp.lt.u32.totalorder %s440_s12, %s516_s2 }
  0x5e   :  { %p446_p9 = pnand %p444_p8, %p441_p7 }
  0x60   :  { %449 = shalt.err (!%p446_p9)
}
  0x61   :  { %s461_s17 = smov 128   ;;  %s462_s18 = smov 8  }
  0x62   :  { %363 = dma.vmem_to_hbm [thread:$0]  %s358_s8, 512, %s516_s2, [#allocation4], %s461_s17, %s461_s17, %s462_s18  }
  0x63   :  { %454 = dma.done.wait [#allocation4], 512  }
  0x64   :  { %455 = vsyncadd [#allocation4], 4294966784 }
  0x65   :  { %367 = vsyncpa [#allocation3], 1 }
  0x66   :  { %368 = vsyncpa [#allocation6], 1 }
  0x67   :  { %369 = vsyncpa [#allocation4], 1 }

</bundles_post_ra>
